<compile_context>
chip_gen: v6e
topology: v6e:2x2x1
jax: 0.10.0
libtpu: 0.0.40
codegen_flags: <defaults>
</compile_context>

<pallas_src>
import jax
import jax.numpy as jnp
from jax.experimental import pallas as pl
from jax.experimental.pallas import tpu as pltpu


_LANE = 128
_VMEM_TILE_BUDGET = 24 * 1024 * 1024  # double-buffered block budget (all gens)


# ----------------------------------------------------------------------------
# Pallas kernel: one grid step reads a (1, tile_rows, lane) source tile and
# writes B broadcast copies into the (1, B, tile_rows, lane) output block.
# ----------------------------------------------------------------------------
def _bcast_batch_kernel(src_ref, out_ref):
    src = src_ref[...]                                  # (1, tile_rows, lane)
    out_ref[...] = jnp.broadcast_to(src[:, None, :, :], out_ref.shape)


def _choose_tile_rows(rows, max_rows):
    """Largest row-tile that fits `max_rows`, divides `rows`, multiple of 8."""
    if rows <= max_rows:
        return rows
    start = (min(rows, max_rows) // 8) * 8
    for cand in range(start, 7, -8):
        if rows % cand == 0:
            return cand
    # TODO(synk): no 8-aligned divisor found (pathological row count) -- fall
    # back to one full-rows block.
    return rows


def _expand_batch_pallas(src, batch):
    """src: [N, rows, lane] -> [N, batch, rows, lane] (broadcast along batch)."""
    n, rows, lane = src.shape
    itemsize = jnp.dtype(src.dtype).itemsize

    per_row_bytes = (1 + batch) * lane * itemsize       # in-row + B out-rows
    max_rows = max(1, _VMEM_TILE_BUDGET // (2 * per_row_bytes))
    tile_rows = _choose_tile_rows(rows, max_rows)
    n_row_tiles = rows // tile_rows

    in_block_bytes = tile_rows * lane * itemsize
    out_block_bytes = batch * tile_rows * lane * itemsize
    vmem_limit = max(2 * (in_block_bytes + out_block_bytes) + (2 << 20), 4 << 20)

    return pl.pallas_call(
        _bcast_batch_kernel,
        out_shape=jax.ShapeDtypeStruct((n, batch, rows, lane), src.dtype),
        grid=(n, n_row_tiles),
        in_specs=[pl.BlockSpec((1, tile_rows, lane), lambda l, r: (l, r, 0))],
        out_specs=pl.BlockSpec(
            (1, batch, tile_rows, lane), lambda l, r: (l, 0, r, 0)
        ),
        compiler_params=pltpu.CompilerParams(
            dimension_semantics=("parallel", "parallel"),
            vmem_limit_bytes=int(vmem_limit),
        ),
    )(src)


def _lane_dense_view(shape):
    """Pick a lane-dense (rows, lane) factorization of (H, S, D)."""
    _, H, S, D = shape
    total = H * S * D
    if total % _LANE == 0:
        return total // _LANE, _LANE        # lane-dense: unmasked 128-lane stores
    return H * S, D                          # fallback: native last dim


def _expand_one(t, batch):
    _, H, S, D = t.shape
    rows, lane = _lane_dense_view(t.shape)
    out = _expand_batch_pallas(t.reshape(1, rows, lane), batch)
    return out[0].reshape(batch, H, S, D)


def expand_kv_cache(kv, batch):
    """Expand every [1, H, S, D] tensor in the kv cache to [batch, H, S, D]
    using a single fused Pallas kernel (all layers + K/V in one call)."""
    tensors = [t for layer_kv in kv for t in layer_kv]
    for t in tensors:
        if t.shape[0] != 1:
            raise ValueError(
                "The size of the first dimension must be 1 for expansion. "
                f"The shape of tensor: {t.shape}"
            )

    ref = tensors[0]
    if not all(t.shape == ref.shape and t.dtype == ref.dtype for t in tensors):
        # Heterogeneous cache: expand each tensor on its own (still lane-dense).
        return [
            [_expand_one(layer_kv[0], batch), _expand_one(layer_kv[1], batch)]
            for layer_kv in kv
        ]

    _, H, S, D = ref.shape
    rows, lane = _lane_dense_view(ref.shape)

    # One fused source array: [num_layers * 2, rows, lane].
    src = jnp.stack([t.reshape(rows, lane) for t in tensors], axis=0)
    out = _expand_batch_pallas(src, batch)        # (L*2, batch, rows, lane)

    expanded = []
    for li in range(len(kv)):
        k = out[2 * li].reshape(batch, H, S, D)
        v = out[2 * li + 1].reshape(batch, H, S, D)
        expanded.append([k, v])
    return expanded


# ----------------------------------------------------------------------------
# JAX-side BaseLearner: glue logic mirroring the PyTorch forward().
# ----------------------------------------------------------------------------
class BaseLearner:
    def __init__(self, kv=None):
        # kv: list (per layer) of [key, value], each [1 or B, H, S, D]
        self.kv = kv

    def update_kv(self, new_kv):
        self.kv = new_kv

    def clear_cache(self):
        self.kv = None

    def forward(self, input_ids):
        if self.kv is None:
            print("Warning! The leaner has not been trained!")
            past_key_values = None
        else:
            batch_size = input_ids.shape[0]
            if self.kv[0][0].shape[0] != batch_size:
                past_key_values = expand_kv_cache(self.kv, batch_size)
            else:
                past_key_values = self.kv
        # TODO(synk): self.model(...) is abstract (load_model raises
        # NotImplementedError) -- no LLM forward to translate; return the
        # expanded past_key_values that would be fed to it.
        return past_key_values


if __name__ == "__main__":
    # Small, deterministic synthetic shapes.
    num_layers = 2
    num_heads = 4
    seq_len = 8
    head_dim = 32
    batch_size = 2

    key = jax.random.PRNGKey(0)
    kv = []
    for layer in range(num_layers):
        key, k1, k2 = jax.random.split(key, 3)
        k_cache = jax.random.normal(k1, (1, num_heads, seq_len, head_dim), jnp.float32)
        v_cache = jax.random.normal(k2, (1, num_heads, seq_len, head_dim), jnp.float32)
        kv.append([k_cache, v_cache])

    key, ki = jax.random.split(key)
    input_ids = jax.random.randint(ki, (batch_size, 16), 0, 1000, dtype=jnp.int32)

    learner = BaseLearner(kv=kv)
    expanded_kv = learner.forward(input_ids)

    # Block on results and verify semantics against pure-JAX broadcast.
    for layer_idx, (k_exp, v_exp) in enumerate(expanded_kv):
        jax.block_until_ready(k_exp)
        jax.block_until_ready(v_exp)
        assert k_exp.shape == (batch_size, num_heads, seq_len, head_dim)
        assert v_exp.shape == (batch_size, num_heads, seq_len, head_dim)
        k_ref = jnp.broadcast_to(
            kv[layer_idx][0], (batch_size, num_heads, seq_len, head_dim)
        )
        v_ref = jnp.broadcast_to(
            kv[layer_idx][1], (batch_size, num_heads, seq_len, head_dim)
        )
        assert jnp.array_equal(k_exp, k_ref)
        assert jnp.array_equal(v_exp, v_ref)

    print("KERNEL_OK")
</pallas_src>

<mosaic_0001>
module attributes {stable_mosaic.version = 11 : i64} {
  func.func @_bcast_batch_kernel(%arg0: i32, %arg1: i32, %arg2: memref<1x8x128xf32, #tpu.memory_space<vmem>>, %arg3: memref<1x2x8x128xf32, #tpu.memory_space<vmem>>) attributes {dimension_semantics = [#tpu.dimension_semantics<parallel>, #tpu.dimension_semantics<parallel>], iteration_bounds = array<i64: 4, 1>, scalar_prefetch = 0 : i64, scratch_operands = 0 : i64, tpu.core_type = #tpu.core_type<tc>, window_params = [{transform_indices = @transform_0, window_bounds = array<i64: 1, 8, 128>}, {transform_indices = @transform_1, window_bounds = array<i64: 1, 2, 8, 128>}]} {
    %c0 = arith.constant 0 : index
    %c0_0 = arith.constant 0 : index
    %c0_1 = arith.constant 0 : index
    %0 = vector.load %arg2[%c0, %c0_0, %c0_1] : memref<1x8x128xf32, #tpu.memory_space<vmem>>, vector<1x8x128xf32>
    %1 = vector.shape_cast %0 : vector<1x8x128xf32> to vector<1x1x8x128xf32>
    %2 = vector.shape_cast %1 : vector<1x1x8x128xf32> to vector<1x1x8x128xf32>
    %3 = vector.broadcast %2 : vector<1x1x8x128xf32> to vector<1x2x8x128xf32>
    %c0_2 = arith.constant 0 : index
    %c0_3 = arith.constant 0 : index
    %c0_4 = arith.constant 0 : index
    %c0_5 = arith.constant 0 : index
    %4 = vector.load %arg3[%c0_2, %c0_3, %c0_4, %c0_5] : memref<1x2x8x128xf32, #tpu.memory_space<vmem>>, vector<1x2x8x128xf32>
    tpu.vector_store %arg3[%c0_2, %c0_3, %c0_4, %c0_5], %3 {strides = array<i32>} : memref<1x2x8x128xf32, #tpu.memory_space<vmem>>, vector<1x2x8x128xf32>,
    return
  }
  func.func @transform_0(%arg0: i32, %arg1: i32) -> (i32, i32, i32) {
    %c0_i32 = arith.constant 0 : i32
    %c0_i32_0 = arith.constant 0 : i32
    return %arg0, %arg1, %c0_i32 : i32, i32, i32
  }
  func.func @transform_1(%arg0: i32, %arg1: i32) -> (i32, i32, i32, i32) {
    %c0_i32 = arith.constant 0 : i32
    %c0_i32_0 = arith.constant 0 : i32
    %c0_i32_1 = arith.constant 0 : i32
    return %arg0, %c0_i32, %arg1, %c0_i32_0 : i32, i32, i32, i32
  }
}

</mosaic_0001>

<bundles_post_ra>
// kernel: tpu_custom_call.1
= control target key start
LH: loop header
LB: loop body
LE: loop exit
PB: predicated region body
PF: predicated region fallthrough
CT: control target
= control target key end

     0   :  { %6 = vsyncpa [#allocation3], 0  ;;  %s601_s0 = inlined_call_operand.hbm [shape: f32[4,8,128], index: 0, kind: input, shape index: {}]   ;;  %s602_s1 = inlined_call_operand.hbm [shape: f32[4,2,8,128], index: 1, kind: output, shape index: {}]  }
   0x1   :  { %8 = vsyncpa [#allocation3 + $0x1], 0 }
   0x2   :  { %9 = vsyncpa [#allocation4], 0 }
   0x3   :  { %11 = vsyncpa [#allocation4 + $0x1], 0  ;;  %s454_s6 = smov 0   ;;  %s456_s7 = smov 0  }
   0x4   :  { %s458_s8 = smov 0   ;;  %s460_s9 = smov 0  }
   0x5   :  { %s462_s10 = smov 0   ;;  %s464_s11 = smov 0  }
   0x6 LB: > { %s251_s12 = sadd.s32 4294967295, %s438_s11   ;;  %s252_s13 = sadd.s32 4294967294, %s438_s11   ;;  %s438_s11 = sphi %s464_s11, %s17_s11   ;;  %s434_s10 = sphi %s462_s10, %s613_s10   ;;  %s430_s9 = sphi %s460_s9, %s612_s9   ;;  %s426_s8 = sphi %s458_s8, %s611_s8   ;;  %s422_s7 = sphi %s456_s7, %s610_s7   ;;  %s418_s6 = sphi %s454_s6, %s609_s6  }
   0x7   : > { %s29_s14 = sadd.s32 1, %s434_s10  ;;  %s38_s15 = sadd.s32 1, %s426_s8 }
   0x8   : > { %p31_p0 = scmp.ge.s32.totalorder %s29_s14, 4  ;;  %p45_p1 = scmp.ne.s32.totalorder %s426_s8, %s422_s7 }
   0x9   : > { %p46_p2 = scmp.eq.s32.totalorder %s438_s11, 0  ;;  %p51_p3 = scmp.ne.s32.totalorder %s422_s7, %s418_s6 }
   0xa   : > { %s615_s14 = smov (%p31_p0, %s29_s14), 0  ;;  %p52_p5 = scmp.eq.s32.totalorder %s251_s12, 0 }
   0xb   : > { %p495_p4 = por %p46_p2, %p45_p1  ;;  %s33_s17 = ssub.s32 %s434_s10, %s615_s14 }
   0xc   : > { %p77_p6 = scmp.eq.s32.totalorder %s251_s12, 3  ;;  %p36_p7 = scmp.eq.s32.totalorder %s33_s17, 0 }
   0xd   : > { %p501_p8 = por %p52_p5, %p51_p3  ;;  %p83_p10 = scmp.eq.s32.totalorder %s252_s13, 3 }
   0xe   : > { %p505_p9 = por %p77_p6, %p45_p1  ;;  %p278_p12 = scmp.lt.s32.totalorder %s438_s11, 4 }
   0xf   : > { %s510_s20 = scalar_select %p36_p7, %s426_s8, %s38_s15  }
  0x10   : > { %p512_p11 = por %p83_p10, %p51_p3  ;;  %s103_s22 = sand.u32 1, %s426_s8  }
  0x11   : > { %s255_s23 = sshll.u32 %s103_s22, 3  ;;  %s256_s24 = sshll.u32 %s434_s10, 7 }
  0x12   : > { %s606_s21 = scalar_select %p512_p11, 1, 0 }
  0x13   : > { %s113_s27 = scalar_lea.hbm %s601_s0, %s256_s24  ;;  %s107_s28 = scalar_lea.vmem [#allocation2], %s255_s23 }
  0x14   : > { %s115_s29 = sshll.u32 %s107_s28, 4  ;;  %p524_p13 = pnand %p278_p12, %p495_p4  ;;  %s116_s29 = int_to_ptr.vmem [resolvable:$true] %s115_s29 }
  0x15   : > { %p257_p0 = scmp.ge.s32.totalorder %s438_s11, 1  ;;  %p120_p1 = scmp.lt.s32.totalorder %s438_s11, 5 }
  0x16   : > { %s104_s2 = scalar_lea.sflag [#allocation3], %s103_s22  ;;  %p332_p2 = pneg %p524_p13 }
  0x17   : > { %s343_s3 = scalar_lea.vmem %s116_s29, 128  ;;  %s440_s4 = smov [#allocation2]  }
  0x18   : > { %p344_p3 = scmp.ne.s32.totalorder %s116_s29, %s343_s3  ;;  %s348_s5 = sshll.u32 %s440_s4, 4  ;;  %s349_s5 = int_to_ptr.vmem [resolvable:$false] %s348_s5 }
  0x19   : > { %s350_s12 = scalar_lea.vmem %s349_s5, 256  ;;  %p351_p7 = scmp.lt.s32.totalorder %s116_s29, %s349_s5 }
  0x1a   : > { %p346_p5 = pnand %p344_p3, %p332_p2  ;;  %p352_p10 = scmp.lt.s32.totalorder %s350_s12, %s343_s3 }
  0x1c   : > { %p347_p6 = pneg %p346_p5  ;;  %p353_p4 = por %p352_p10, %p351_p7 }
  0x1e   : > { %p354_p12 = pnand %p353_p4, %p347_p6 }
  0x20   : > { %357 = shalt.err (!%p354_p12)
}
  0x21   : > { %273 = dma.hbm_to_vmem [thread:$0]  (!%p524_p13), %s113_s27, 128, %s116_s29, %s104_s2  }
  0x22   : > { %p121_p11 = pnand %p257_p0, %p120_p1 }
  0x23   : > { %s539_s13 = sand.u32 (!%p121_p11), 1, %s422_s7  }
  0x24   : > { %124 = sbr.rel (%p121_p11) target bundleno = 67 (0x43), region = 24  ;;  %s258_s15 = sshll.u32 (!%p121_p11), %s539_s13, 3 }
  0x25   : > { %s127_s16 = scalar_lea.sflag (!%p121_p11), [#allocation3], %s539_s13  ;;  %s130_s17 = scalar_lea.vmem (!%p121_p11), [#allocation2], %s258_s15 }
  0x29   : > { %409 = dma.done.wait (%p501_p8), %s127_s16, 128  }
  0x2a   : > { %411 = vsyncadd (%p501_p8), %s127_s16, 4294967168  ;;  %s259_s22 = sshll.u32 %s539_s13, 4  ;;  %s265_s25 = sshll.u32 %s430_s9, 8  ;;  %v149_v0 = vld [vmem:[%s130_s17] sm:$0xff] }
  0x2b   : > { %s148_s23 = scalar_lea.vmem [#allocation5], %s259_s22  ;;  %s554_s28 = scalar_lea.hbm %s602_s1, %s265_s25 }
  0x2c   : > { %s167_s24 = sshll.u32 %s148_s23, 4  ;;  %150 = vst [vmem:[%s148_s23] sm:$0xff] %v149_v0  ;;  %151 = vst [vmem:[%s148_s23 + $0x8] sm:$0xff] %v149_v0  ;;  %s153_s18 = scalar_lea.sflag [#allocation4], %s539_s13  ;;  %s549_s24 = int_to_ptr.vmem [resolvable:$true] %s167_s24 }
  0x2d   : > { %s358_s29 = scalar_lea.vmem %s549_s24, 256  ;;  %s441_s9 = smov [#allocation5]  }
  0x2e   : > { %p359_p8 = scmp.ne.s32.totalorder %s549_s24, %s358_s29  ;;  %s362_s30 = sshll.u32 %s441_s9, 4  ;;  %s363_s30 = int_to_ptr.vmem [resolvable:$false] %s362_s30 }
  0x2f   : > { %s364_s2 = scalar_lea.vmem %s363_s30, 512  ;;  %p365_p0 = scmp.lt.s32.totalorder %s549_s24, %s363_s30 }
  0x30   : > { %p360_p11 = pnand %p359_p8, %p505_p9  ;;  %p366_p1 = scmp.lt.s32.totalorder %s364_s2, %s358_s29 }
  0x32   : > { %p361_p13 = pneg %p360_p11  ;;  %p367_p2 = por %p366_p1, %p365_p0 }
  0x34   : > { %p368_p3 = pnand %p367_p2, %p361_p13 }
  0x36   : > { %371 = shalt.err (!%p368_p3)
}
  0x37   : > { %s372_s3 = scalar_lea.hbm %s554_s28, 256  ;;  %s376_s12 = scalar_lea.hbm %s602_s1, 1024 }
  0x38   : > { %p373_p5 = scmp.ne.s32.totalorder %s554_s28, %s372_s3  ;;  %p377_p10 = scmp.lt.s32.totalorder %s554_s28, %s602_s1 }
  0x39   : > { %p378_p4 = scmp.lt.s32.totalorder %s376_s12, %s372_s3 }
  0x3a   : > { %p374_p6 = pnand %p373_p5, %p505_p9 }
  0x3b   : > { %p379_p12 = por %p378_p4, %p377_p10 }
  0x3c   : > { %p375_p7 = pneg %p374_p6 }
  0x3e   : > { %p380_p8 = pnand %p379_p12, %p375_p7 }
  0x40   : > { %383 = shalt.err (!%p380_p8)
}
  0x41   : > { %s442_s17 = smov 128   ;;  %s443_s22 = smov 8  }
  0x42   : > { %268 = dma.vmem_to_hbm [thread:$0]  (%p505_p9), %s549_s24, 256, %s554_s28, %s153_s18, %s442_s17, %s442_s17, %s443_s22  }
  0x43 PF: > { %p279_p11 = scmp.ge.s32.totalorder %s438_s11, 2  ;;  %s182_s23 = sand.u32 1, %s418_s6  }
  0x44   : > { %p608_p13 = scmp.ne.s32.totalorder %s606_s21, 0  ;;  %s183_s25 = scalar_lea.sflag [#allocation4], %s182_s23 }
  0x46   : > { %p275_p0 = pnand %p279_p11, %p608_p13 }
  0x48   : > { %p276_p1 = pneg %p275_p0 }
  0x4a   : > { %413 = dma.done.wait (%p276_p1), %s183_s25, 256  }
  0x4b   : > { %415 = vsyncadd (%p276_p1), %s183_s25, 4294967040  ;;  %s17_s11 = sadd.s32 1, %s438_s11   ;;  %s609_s6 = smov %s422_s7 }
  0x4c   : > { %p14_p2 = scmp.ge.s32.totalorder %s17_s11, 6   ;;  %s610_s7 = smov %s426_s8 }
  0x4d   : > { %s611_s8 = smov %s510_s20  ;;  %s612_s9 = smov %s434_s10 }
  0x4e   : > { %s613_s10 = smov %s615_s14  ;;  %16 = sbr.rel (!%p14_p2) target bundleno = 6 (0x6), region = 69 }
  0x53   :  { %188 = vsyncpa [#allocation3], 1 }
  0x54   :  { %190 = vsyncpa [#allocation3 + $0x1], 1 }
  0x55   :  { %191 = vsyncpa [#allocation4], 1 }
  0x56   :  { %193 = vsyncpa [#allocation4 + $0x1], 1 }

</bundles_post_ra>
